<compile_context>
chip_gen: v5e
topology: v5e:2x2
jax: 0.10.0
libtpu: 0.0.40
codegen_flags: <defaults>
</compile_context>

<pallas_src>
import functools
import math

import jax
import jax.numpy as jnp
from jax.experimental import pallas as pl
from jax.experimental.pallas import tpu as pltpu


def _fused_conv_bn_relu_kernel(x_ref, w_ref, shift_ref, o_ref):
    # x_ref:     (C_in_p, TS)      channels-first spatial tile (lane-dense)
    # w_ref:     (C_out_p, C_in_p) pointwise-conv weight with BN scale folded in
    # shift_ref: (C_out_p, 1)      folded BN shift = beta - mean * gamma/sqrt(var+eps)
    # o_ref:     (C_out_p, TS)
    y = jnp.dot(w_ref[...], x_ref[...], preferred_element_type=jnp.float32)
    o_ref[...] = jnp.maximum(y + shift_ref[...], 0.0).astype(o_ref.dtype)


def _round_up(a, b):
    return (a + b - 1) // b * b


def _choose_spatial_tile(s, n_batch, c_in, c_out, itemsize,
                         stream_budget_bytes=24 << 20, ts_hard_cap=65536):
    """Pick the lane-axis tile TS: a multiple of 128, or the full extent.

    TS is sized from a VMEM budget for the double-buffered streaming
    input + output tiles (fits v5e/v6e 128 MiB and v7x 64 MiB VMEM).
    """
    per_elem = 2 * (c_in + c_out) * itemsize          # 2 buffers, in + out
    ts_cap = min(max(stream_budget_bytes // per_elem, 128), ts_hard_cap)
    ts_cap = (ts_cap // 128) * 128

    # v7x has 2 TensorCores: with a single batch, make sure there are >=2
    # grid steps so both cores (and both DMA paths) get work.
    need_split = (n_batch == 1 and s >= 256)

    if s <= ts_cap and not need_split:
        return s                                      # one full-extent block
    if need_split:
        ts_cap = min(ts_cap, max(128, (s // 2) // 128 * 128))

    # Prefer a tile that divides S exactly (no ragged last block).
    ts = ts_cap
    while ts >= 128:
        if s % ts == 0:
            return ts
        ts -= 128
    # No dividing tile: ragged last block, Pallas masks the OOB store.
    return ts_cap


@jax.jit
def basic_conv3d(x, conv_weight, bn_gamma, bn_beta, bn_mean, bn_var, eps=1e-5):
    """x: (N, C_in, D, H, W).  conv_weight: (C_out, C_in, 1, 1, 1)."""
    # TODO(synk): only kernel_size=1, stride=1, padding=0 (the module defaults)
    # and eval-mode BatchNorm are implemented; general KxKxK conv / training-
    # mode BN (batch stats + running-stat update) are not.
    N, C_in, D, H, W = x.shape
    C_out = conv_weight.shape[0]
    S = D * H * W
    itemsize = jnp.dtype(x.dtype).itemsize

    # Fold BN (inference) into the weight (scale) and a per-channel shift.
    scale = bn_gamma / jnp.sqrt(bn_var + eps)                         # (C_out,)
    shift = (bn_beta - bn_mean * scale).astype(jnp.float32)          # (C_out,)
    w_scaled = (conv_weight.reshape(C_out, C_in)
                * scale[:, None]).astype(jnp.float32)                # (C_out, C_in)

    # ---- Sublane packing: fold a spatial factor f into the channel axis so
    # the second-minor dim is a multiple of the sublane tiling (8 for f32).
    # x[n, ci, j*(S/f)+t] == x_packed[n, ci*f + j, t]  (pure row-major reshape)
    # and the matching weight is the block-diagonal kron(W, I_f).
    sub = 32 // itemsize                          # 8 (f32), 16 (bf16), 32 (i8)
    f = sub // math.gcd(C_in, sub)
    if f > 1 and S % f != 0:
        f = 1                                     # can't split S -> skip packing
    C_in_p, C_out_p, S_p = C_in * f, C_out * f, S // f

    x3 = x.reshape(N, C_in_p, S_p)                # free row-major reshape
    if f > 1:
        w_scaled = jnp.kron(w_scaled, jnp.eye(f, dtype=w_scaled.dtype))
        shift = jnp.repeat(shift, f)
    shift = shift.reshape(C_out_p, 1)

    # ---- Spatial tile and grid (no padding, no post-slice).
    TS = _choose_spatial_tile(S_p, N, C_in_p, C_out_p, itemsize)
    n_s = -(-S_p // TS)
    grid = (N, n_s)

    # ---- VMEM budget for the chosen tile (double-buffered in + out) and an
    # explicit scoped-VMEM limit so the compiler accepts it on every gen.
    stream_bytes = 2 * (C_in_p + C_out_p) * TS * itemsize
    fixed_bytes = (C_out_p * C_in_p + C_out_p) * 4
    vmem_limit = int(min(max(stream_bytes + fixed_bytes + (4 << 20), 16 << 20),
                         48 << 20))

    # ---- Advisory cost estimate with layout-padded (sublane/lane) traffic.
    lane_elems = _round_up(n_s * TS, 128)
    bytes_accessed = (N * (_round_up(C_in_p, sub) + _round_up(C_out_p, sub))
                      * lane_elems * itemsize
                      + C_out_p * (C_in_p + 1) * 4)
    flops = 2 * N * S_p * C_in_p * C_out_p

    out3 = pl.pallas_call(
        _fused_conv_bn_relu_kernel,
        out_shape=jax.ShapeDtypeStruct((N, C_out_p, S_p), x.dtype),
        grid_spec=pltpu.PrefetchScalarGridSpec(
            num_scalar_prefetch=0,
            grid=grid,
            in_specs=[
                pl.BlockSpec((None, C_in_p, TS), lambda n, s: (n, 0, s)),
                pl.BlockSpec((C_out_p, C_in_p), lambda n, s: (0, 0)),
                pl.BlockSpec((C_out_p, 1), lambda n, s: (0, 0)),
            ],
            out_specs=pl.BlockSpec((None, C_out_p, TS), lambda n, s: (n, 0, s)),
        ),
        compiler_params=pltpu.CompilerParams(
            dimension_semantics=("parallel", "parallel"),
            vmem_limit_bytes=vmem_limit),
        cost_estimate=pl.CostEstimate(
            flops=flops, transcendentals=0, bytes_accessed=bytes_accessed),
    )(x3, w_scaled, shift)

    # Free row-major reshape back: (N, C_out*f, S/f) -> (N, C_out, D, H, W).
    return out3.reshape(N, C_out, D, H, W)


def _reference(x, conv_weight, bn_gamma, bn_beta, bn_mean, bn_var, eps=1e-5):
    # Pure-JAX reference of the same forward pass (eval-mode BN).
    C_out, C_in = conv_weight.shape[0], conv_weight.shape[1]
    w = conv_weight.reshape(C_out, C_in)
    y = jnp.einsum("ncdhw,oc->nodhw", x, w)
    scale = (bn_gamma / jnp.sqrt(bn_var + eps)).reshape(1, C_out, 1, 1, 1)
    shift = (bn_beta - bn_mean * bn_gamma / jnp.sqrt(bn_var + eps)).reshape(
        1, C_out, 1, 1, 1)
    return jnp.maximum(y * scale + shift, 0.0)


if __name__ == "__main__":
    key = jax.random.PRNGKey(0)
    kx, kw, kg, kb, km, kv = jax.random.split(key, 6)

    N, C_in, C_out, D, H, W = 2, 4, 8, 4, 8, 8
    x = jax.random.normal(kx, (N, C_in, D, H, W), dtype=jnp.float32)

    # Deterministic synthetic parameters (module __init__ shapes).
    conv_weight = jax.random.normal(kw, (C_out, C_in, 1, 1, 1),
                                    dtype=jnp.float32) * 0.2
    bn_gamma = 1.0 + 0.1 * jax.random.normal(kg, (C_out,), dtype=jnp.float32)
    bn_beta = 0.1 * jax.random.normal(kb, (C_out,), dtype=jnp.float32)
    bn_mean = 0.05 * jax.random.normal(km, (C_out,), dtype=jnp.float32)
    bn_var = jnp.abs(1.0 + 0.1 * jax.random.normal(kv, (C_out,),
                                                   dtype=jnp.float32))

    out = basic_conv3d(x, conv_weight, bn_gamma, bn_beta, bn_mean, bn_var)
    out = jax.block_until_ready(out)

    ref = _reference(x, conv_weight, bn_gamma, bn_beta, bn_mean, bn_var)
    assert out.shape == (N, C_out, D, H, W)
    assert jnp.allclose(out, ref, atol=1e-4, rtol=1e-4)
    print("KERNEL_OK")
</pallas_src>

<mosaic_0001>
module attributes {stable_mosaic.version = 11 : i64} {
  func.func @_fused_conv_bn_relu_kernel(%arg0: i32, %arg1: i32, %arg2: memref<1x8x128xf32, #tpu.memory_space<vmem>>, %arg3: memref<16x8xf32, #tpu.memory_space<vmem>>, %arg4: memref<16x1xf32, #tpu.memory_space<vmem>>, %arg5: memref<1x16x128xf32, #tpu.memory_space<vmem>>) attributes {dimension_semantics = [#tpu.dimension_semantics<parallel>, #tpu.dimension_semantics<parallel>], iteration_bounds = array<i64: 2, 1>, scalar_prefetch = 0 : i64, scratch_operands = 0 : i64, tpu.core_type = #tpu.core_type<tc>, window_params = [{transform_indices = @transform_0, window_bounds = array<i64: 1, 8, 128>}, {pipeline_mode = #tpu.pipeline_mode<synchronous>, transform_indices = @transform_1, window_bounds = array<i64: 16, 8>}, {pipeline_mode = #tpu.pipeline_mode<synchronous>, transform_indices = @transform_2, window_bounds = array<i64: 16, 1>}, {transform_indices = @transform_3, window_bounds = array<i64: 1, 16, 128>}]} {
    %c0 = arith.constant 0 : index
    %c0_0 = arith.constant 0 : index
    %0 = vector.load %arg3[%c0, %c0_0] : memref<16x8xf32, #tpu.memory_space<vmem>>, vector<16x8xf32>
    %c0_1 = arith.constant 0 : index
    %c0_2 = arith.constant 0 : index
    %c0_3 = arith.constant 0 : index
    %1 = vector.load %arg2[%c0_1, %c0_2, %c0_3] : memref<1x8x128xf32, #tpu.memory_space<vmem>>, vector<1x8x128xf32>
    %2 = vector.shape_cast %1 : vector<1x8x128xf32> to vector<8x128xf32>
    %cst = arith.constant dense<0.000000e+00> : vector<16x128xf32>
    %3 = tpu.matmul %0, %2, %cst {dimension_numbers = #tpu.dot_dimension_numbers<[1], [0], [0], [1], [0, 0, 1, 1], [], []>} : vector<16x8xf32>, vector<8x128xf32>, vector<16x128xf32> -> vector<16x128xf32>
    %c0_4 = arith.constant 0 : index
    %c0_5 = arith.constant 0 : index
    %4 = vector.load %arg4[%c0_4, %c0_5] : memref<16x1xf32, #tpu.memory_space<vmem>>, vector<16x1xf32>
    %5 = vector.broadcast %4 : vector<16x1xf32> to vector<16x128xf32>
    %6 = arith.addf %3, %5 : vector<16x128xf32>
    %cst_6 = arith.constant 0.000000e+00 : f32
    %7 = vector.broadcast %cst_6 : f32 to vector<16x128xf32>
    %8 = arith.maximumf %6, %7 : vector<16x128xf32>
    %c0_7 = arith.constant 0 : index
    %c0_8 = arith.constant 0 : index
    %c0_9 = arith.constant 0 : index
    %9 = vector.load %arg5[%c0_7, %c0_8, %c0_9] : memref<1x16x128xf32, #tpu.memory_space<vmem>>, vector<1x16x128xf32>
    %10 = vector.shape_cast %9 : vector<1x16x128xf32> to vector<16x128xf32>
    %11 = vector.shape_cast %8 : vector<16x128xf32> to vector<1x16x128xf32>
    tpu.vector_store %arg5[%c0_7, %c0_8, %c0_9], %11 {strides = array<i32>} : memref<1x16x128xf32, #tpu.memory_space<vmem>>, vector<1x16x128xf32>,
    return
  }
  func.func @transform_0(%arg0: i32, %arg1: i32) -> (i32, i32, i32) {
    %c0_i32 = arith.constant 0 : i32
    %c0_i32_0 = arith.constant 0 : i32
    return %arg0, %c0_i32, %arg1 : i32, i32, i32
  }
  func.func @transform_1(%arg0: i32, %arg1: i32) -> (i32, i32) {
    %c0_i32 = arith.constant 0 : i32
    %c0_i32_0 = arith.constant 0 : i32
    %c0_i32_1 = arith.constant 0 : i32
    return %c0_i32, %c0_i32_0 : i32, i32
  }
  func.func @transform_2(%arg0: i32, %arg1: i32) -> (i32, i32) {
    %c0_i32 = arith.constant 0 : i32
    %c0_i32_0 = arith.constant 0 : i32
    %c0_i32_1 = arith.constant 0 : i32
    return %c0_i32, %c0_i32_0 : i32, i32
  }
  func.func @transform_3(%arg0: i32, %arg1: i32) -> (i32, i32, i32) {
    %c0_i32 = arith.constant 0 : i32
    %c0_i32_0 = arith.constant 0 : i32
    return %arg0, %c0_i32, %arg1 : i32, i32, i32
  }
}

</mosaic_0001>

<bundles_post_ra>
// kernel: basic_conv3d.1
= control target key start
LH: loop header
LB: loop body
LE: loop exit
PB: predicated region body
PF: predicated region fallthrough
CT: control target
= control target key end

     0   :  { %s413_s12 = smov 0   ;;  %s415_s13 = smov 0   ;;  %s458_s0 = inlined_call_operand.vmem [shape: f32[2,8,128], index: 0, kind: input, shape index: {}]   ;;  %s459_s1 = inlined_call_operand.vmem [shape: f32[16,8], index: 1, kind: input, shape index: {}]   ;;  %s460_s2 = inlined_call_operand.vmem [shape: f32[16,1], index: 2, kind: input, shape index: {}]   ;;  %s461_s3 = inlined_call_operand.vmem [shape: f32[2,16,128], index: 3, kind: output, shape index: {}]  }
   0x1   :  { %s417_s14 = smov 0  }
   0x2 LB: > { %s25_s15 = sadd.s32 1, %s386_s13  ;;  %p332_p0 = scmp.ge.s32.totalorder %s390_s14, 1  ;;  %s390_s14 = sphi %s417_s14, %s13_s14   ;;  %s386_s13 = sphi %s415_s13, %s463_s13   ;;  %s382_s12 = sphi %s413_s12, %s462_s12  }
   0x3   : > { %p27_p1 = scmp.ge.s32.totalorder %s25_s15, 2  ;;  %p155_p2 = scmp.lt.s32.totalorder %s390_s14, 3 }
   0x5   : > { %s465_s15 = smov (%p27_p1, %s25_s15), 0  ;;  %p156_p3 = pnand %p332_p0, %p155_p2 }
   0x6   : > { %p184_p4 = scmp.lt.s32.totalorder (!%p156_p3), %s382_s12, 1 }
   0x7   : > { %159 = sbr.rel (%p156_p3) target bundleno = 149 (0x95), region = 32 }
   0xc   : > { %v202_v0 = vld [vmem:[%s460_s2] sm:$0xff]  ;;  %v392_v1 = vmov 0   ;;  %s467_s12 = smov (!%p184_p4, %s382_s12), 1  ;;  %vm214_vm0 = vcmask 64512   ;;  %v200_v3 = vld [vmem:[%s459_s1 + $0x8] sm:$0xff] }
   0xd   : > { %367 = vset.pattern.permute.xlu0 %v392_v1  ;;  %s333_s18 = sshll.u32 %s467_s12, 3  ;;  %v199_v2 = vld [vmem:[%s459_s1] sm:$0xff]  ;;  %v203_v5 = vld [vmem:[%s460_s2 + $0x8] sm:$0xff]  ;;  %s340_s28 = sshll.u32 %s467_s12, 4 }
   0xe   : > { %206 = vperm.xlu0 %367, %v202_v0   ;;  %s190_s21 = scalar_lea.vmem %s458_s0, %s333_s18  ;;  %s198_s4 = scalar_lea.vmem %s461_s3, %s340_s28 }
   0xf   : > { %v201_v4 = vld [vmem:[%s190_s21] sm:$0xff] }
  0x10   : > { %236 = vmatpush.msra.mxu0 %v201_v4  ;;  %341 = vmatpush.msra.mxu1 %v201_v4 }
  0x11   : > { %336 = vmatmul.msk.f32.vlgmr.msra.gmra.mxu0 %vm214_vm0, %v199_v2  ;;  %337 = vmatmul.msk.f32.vlgmr.msra.gmra.mxu1 %vm214_vm0, %v200_v3 }
  0x16   : > { %211 = vperm.xlu0 %367, %v203_v5  }
  0x80   : > { %v207_v6 = vpop.permute.xlu0 %206 }
  0x88   : > { %v212_v7 = vpop.permute.xlu0 %211 }
  0x8e   : > { %v238_v8 = vpop.f32.mrf.mxu0  ;;  %v241_v9 = vpop.f32.mrf.mxu1 }
  0x8f   : > { %v239_v10 = vadd.f32 %v238_v8, %v207_v6  ;;  %v242_v11 = vadd.f32 %v241_v9, %v212_v7 }
  0x91   : > { %v244_v12 = vmax.f32 %v239_v10, 0.0  ;;  %v245_v13 = vmax.f32 %v242_v11, 0.0 }
  0x93   : > { %246 = vst [vmem:[%s198_s4] sm:$0xff] %v244_v12 }
  0x94   : > { %247 = vst [vmem:[%s198_s4 + $0x8] sm:$0xff] %v245_v13 }
  0x95 PF: > { %s13_s14 = sadd.s32 1, %s390_s14   ;;  %s462_s12 = smov %s386_s13 }
  0x96   : > { %p10_p5 = scmp.ge.s32.totalorder %s13_s14, 4   ;;  %s463_s13 = smov %s465_s15 }
  0x98   :  { %12 = sbr.rel (!%p10_p5) target bundleno = 2 (0x2), region = 62 }

</bundles_post_ra>
